<compile_context>
chip_gen: v7x
topology: tpu7x:2x2x1
jax: 0.10.0
libtpu: 0.0.40
codegen_flags: <defaults>
</compile_context>

<pallas_src>
import functools

import jax
import jax.numpy as jnp
from jax import lax
from jax.experimental import pallas as pl
from jax.experimental.pallas import tpu as pltpu

_LANE = 128  # lane-tile width; n_in-sized dims are zero-padded to this


# ------------------------------ fused kernel --------------------------------
def _rnn_decoder_kernel(ins_ref, rel_type_ref,
                        rel_rec_bd_ref, rel_send_bd_ref, rel_rec_t_bd_ref,
                        w1r_ref, w1s_ref, b1_ref, w2_ref, b2_ref,
                        w_in_ref, b_in_ref, w_hid_ref,
                        wo1_ref, bo1_ref, wo2_ref, bo2_ref, wo3_ref, bo3_ref,
                        out_ref, *, pred_steps):
    n_steps, n_rows, DP = ins_ref.shape          # [T-1, bb*N, 128]
    H = wo1_ref.shape[0]
    K = rel_type_ref.shape[1]                    # number of ACTIVE edge types
    f32 = jnp.float32
    dot = functools.partial(jnp.dot, preferred_element_type=f32)

    # Loop-invariant operands: load once, stay live across the time loop.
    rel_rec_bd = rel_rec_bd_ref[...]             # [bb*E, bb*N]
    rel_send_bd = rel_send_bd_ref[...]           # [bb*E, bb*N]
    rel_rec_t_bd = rel_rec_t_bd_ref[...]         # [bb*N, bb*E], pre-scaled 1/n_in
    rt = rel_type_ref[...]                       # [bb*E, K], pre-scaled 1/norm
    w1r, w1s, b1 = w1r_ref[...], w1s_ref[...], b1_ref[...]   # [H,K*H],[H,K*H],[1,K*H]
    w2, b2 = w2_ref[...], b2_ref[...]            # block-diag [K*H,K*H], [1,K*H]
    w_in, b_in = w_in_ref[...], b_in_ref[...]    # [DP,3H], [1,3H]
    w_hid = w_hid_ref[...]                       # [H,3H]
    wo1, bo1 = wo1_ref[...], bo1_ref[...]
    wo2, bo2 = wo2_ref[...], bo2_ref[...]
    wo3, bo3 = wo3_ref[...], bo3_ref[...]        # [H,DP], [1,DP] (lane padded)

    def step(t, carry):
        hid, prev_pred = carry                   # [bb*N,H], [bb*N,DP]

        gt = ins_ref[t]                          # lane-dense [bb*N, DP] load
        if pred_steps == 1:                      # teacher forcing (default)
            inp = gt
        else:                                    # autoregressive feedback
            use_gt = ((t % pred_steps) == 0).astype(f32)
            inp = use_gt * gt + (1.0 - use_gt) * prev_pred

        # node2edge: one matmul per direction for ALL batches (block diagonal).
        recv = dot(rel_rec_bd, hid)              # [bb*E, H]
        send = dot(rel_send_bd, hid)             # [bb*E, H]

        # All edge-type message MLPs fused along the lane dim (split-K fc1,
        # block-diagonal fc2); one tanh per layer shared over edge types.
        m = jnp.tanh(dot(recv, w1r) + dot(send, w1s) + b1)   # [bb*E, K*H]
        m = jnp.tanh(dot(m, w2) + b2)                        # [bb*E, K*H]

        # Weight by (pre-normalized) rel_type and sum over edge types.
        all_msgs = m[:, 0:H] * rt[:, 0:1]
        for k in range(1, K):
            all_msgs = all_msgs + m[:, k * H:(k + 1) * H] * rt[:, k:k + 1]

        # edge2node aggregation; mean over n_in already folded into the matrix.
        agg = dot(rel_rec_t_bd, all_msgs)        # [bb*N, H]

        # GRU cell: 2 fused matmuls (gates stacked along lanes), then slice.
        gi = dot(inp, w_in) + b_in               # [bb*N, 3H]
        gh = dot(agg, w_hid)                     # [bb*N, 3H]
        r = jax.nn.sigmoid(gi[:, 0:H] + gh[:, 0:H])
        i = jax.nn.sigmoid(gi[:, H:2 * H] + gh[:, H:2 * H])
        n = jnp.tanh(gi[:, 2 * H:3 * H] + r * gh[:, 2 * H:3 * H])
        new_hid = (1.0 - i) * n + i * hid

        # Output MLP + residual (dropout is identity at do_prob=0).
        p = jnp.maximum(dot(new_hid, wo1) + bo1, 0.0)
        p = jnp.maximum(dot(p, wo2) + bo2, 0.0)
        p = dot(p, wo3) + bo3                    # padded lanes (>= n_in) stay 0
        pred = inp + p

        out_ref[t] = pred                        # lane-dense store
        return new_hid, pred

    hid0 = jnp.zeros((n_rows, H), f32)
    pred0 = jnp.zeros((n_rows, DP), f32)
    lax.fori_loop(0, n_steps, step, (hid0, pred0))


# ------------------------------ helpers --------------------------------------
def _block_diag(mats):
    rows = sum(m.shape[0] for m in mats)
    cols = sum(m.shape[1] for m in mats)
    out = jnp.zeros((rows, cols), mats[0].dtype)
    r = c = 0
    for m in mats:
        out = out.at[r:r + m.shape[0], c:c + m.shape[1]].set(m)
        r += m.shape[0]
        c += m.shape[1]
    return out


# ------------------------------ Pallas wrapper -------------------------------
def rnn_decoder_forward(params, data, rel_type, rel_rec, rel_send,
                        pred_steps=1, skip_first=False, batch_block=None):
    """data: [B, N, T, D]; rel_type: [B, E, edge_types]; rel_rec/rel_send: [E, N].
    Returns predictions [B, N, T-1, D] (matches RNNDecoder.forward defaults)."""
    B, N, T, D = data.shape
    E = rel_rec.shape[0]
    H = params["wo1"].shape[0]
    ET = params["w2"].shape[0]
    DP = _LANE
    n_steps = T - 1

    start = 1 if skip_first else 0
    K = ET - start                                   # active edge types == norm
    if K < 1:
        raise ValueError("skip_first=True requires edge_types >= 2")

    # >= 2 batch blocks by default so the 'parallel' axis can use both
    # TensorCores on v7x (no effect on single-TC v5e/v6e beyond a cheap step).
    if batch_block is None:
        bb = B // 2 if (B >= 2 and B % 2 == 0) else B
    else:
        bb = int(batch_block)
    if B % bb != 0:
        raise ValueError("batch_block must divide the batch size")
    n_bblk = B // bb

    # per-step ground-truth inputs: [n_bblk, n_steps, bb*N, DP], rows (batch, node)
    steps = jnp.transpose(data[:, :, :n_steps, :], (2, 0, 1, 3))      # [T-1,B,N,D]
    steps = steps.reshape(n_steps, n_bblk, bb * N, D)
    steps = jnp.transpose(steps, (1, 0, 2, 3))
    steps = jnp.pad(steps, ((0, 0), (0, 0), (0, 0), (0, DP - D)))

    # rel_type: keep active edge types only, pre-scale by 1/norm.
    rt = (rel_type[..., start:ET] / float(K)).astype(jnp.float32)
    rt = rt.reshape(n_bblk, bb * E, K)

    # Block-diagonal relation matrices (node2edge / edge2node become single
    # matmuls per step); fold the mean over n_in into rel_rec^T.
    rel_rec_f = rel_rec.astype(jnp.float32)
    rel_send_f = rel_send.astype(jnp.float32)
    rel_rec_bd = _block_diag([rel_rec_f] * bb)                        # [bb*E, bb*N]
    rel_send_bd = _block_diag([rel_send_f] * bb)
    rel_rec_t_bd = jnp.transpose(rel_rec_bd) * (1.0 / float(D))       # [bb*N, bb*E]

    # Fused / stacked weights.
    w1r = jnp.concatenate([params["w1r"][k] for k in range(start, ET)], axis=1)
    w1s = jnp.concatenate([params["w1s"][k] for k in range(start, ET)], axis=1)
    b1 = jnp.concatenate([params["b1"][k] for k in range(start, ET)], axis=1)
    w2_bd = _block_diag([params["w2"][k] for k in range(start, ET)])  # [K*H, K*H]
    b2 = jnp.concatenate([params["b2"][k] for k in range(start, ET)], axis=1)

    w_in = jnp.concatenate([params["w_in"][g] for g in range(3)], axis=1)   # [D,3H]
    w_in = jnp.pad(w_in, ((0, DP - D), (0, 0)))                             # [DP,3H]
    b_in = jnp.concatenate([params["b_in"][g] for g in range(3)], axis=1)   # [1,3H]
    w_hid = jnp.concatenate([params["w_hid"][g] for g in range(3)], axis=1) # [H,3H]

    wo3 = jnp.pad(params["wo3"], ((0, 0), (0, DP - D)))                     # [H,DP]
    bo3 = jnp.pad(params["bo3"], ((0, 0), (0, DP - D)))                     # [1,DP]

    kernel = functools.partial(_rnn_decoder_kernel, pred_steps=pred_steps)

    def const_spec(x):                          # resident across the whole grid
        nd = x.ndim
        return pl.BlockSpec(x.shape, lambda ib: (0,) * nd)

    in_specs = [
        pl.BlockSpec((None, n_steps, bb * N, DP), lambda ib: (ib, 0, 0, 0)),  # steps
        pl.BlockSpec((None, bb * E, K), lambda ib: (ib, 0, 0)),               # rel_type
        const_spec(rel_rec_bd), const_spec(rel_send_bd), const_spec(rel_rec_t_bd),
        const_spec(w1r), const_spec(w1s), const_spec(b1),
        const_spec(w2_bd), const_spec(b2),
        const_spec(w_in), const_spec(b_in), const_spec(w_hid),
        const_spec(params["wo1"]), const_spec(params["bo1"]),
        const_spec(params["wo2"]), const_spec(params["bo2"]),
        const_spec(wo3), const_spec(bo3),
    ]
    out_spec = pl.BlockSpec((None, n_steps, bb * N, DP), lambda ib: (ib, 0, 0, 0))

    grid_spec = pltpu.PrefetchScalarGridSpec(
        num_scalar_prefetch=0,
        grid=(n_bblk,),
        in_specs=in_specs,
        out_specs=out_spec,
    )

    # NOTE: when scaling (large n_steps * bb * N), chunk the time axis and set
    # vmem_limit_bytes explicitly (budget for 64 MiB on v7x).
    out = pl.pallas_call(
        kernel,
        out_shape=jax.ShapeDtypeStruct((n_bblk, n_steps, bb * N, DP), jnp.float32),
        grid_spec=grid_spec,
        compiler_params=pltpu.CompilerParams(
            dimension_semantics=("parallel",)),
    )(steps, rt, rel_rec_bd, rel_send_bd, rel_rec_t_bd,
      w1r, w1s, b1, w2_bd, b2, w_in, b_in, w_hid,
      params["wo1"], params["bo1"], params["wo2"], params["bo2"], wo3, bo3)

    preds = out.reshape(n_bblk, n_steps, bb, N, DP)[..., :D]
    preds = jnp.transpose(preds, (0, 2, 3, 1, 4))        # [n_bblk, bb, N, T-1, D]
    return preds.reshape(B, N, n_steps, D)


# ------------------------- pure-JAX reference (check) ------------------------
def rnn_decoder_reference(params, data, rel_type, rel_rec, rel_send,
                          pred_steps=1, skip_first=False):
    B, N, T, D = data.shape
    H = params["wo1"].shape[0]
    ET = params["w2"].shape[0]
    hp = functools.partial(jnp.matmul, precision=jax.lax.Precision.HIGHEST)
    hidden = jnp.zeros((B, N, H), jnp.float32)
    preds = []
    start = 1 if skip_first else 0
    norm = float(ET - start)
    for step in range(T - 1):
        ins = data[:, :, step, :] if step % pred_steps == 0 else preds[-1]
        recv, send = hp(rel_rec, hidden), hp(rel_send, hidden)      # [B,E,H]
        all_msgs = jnp.zeros((B, rel_rec.shape[0], H), jnp.float32)
        for k in range(start, ET):
            m = jnp.tanh(hp(recv, params["w1r"][k]) + hp(send, params["w1s"][k])
                         + params["b1"][k])
            m = jnp.tanh(hp(m, params["w2"][k]) + params["b2"][k])
            all_msgs = all_msgs + m * rel_type[:, :, k:k + 1] / norm
        agg = jnp.swapaxes(hp(jnp.swapaxes(all_msgs, -2, -1), rel_rec), -2, -1) / D
        r = jax.nn.sigmoid(hp(ins, params["w_in"][0]) + params["b_in"][0]
                           + hp(agg, params["w_hid"][0]))
        i = jax.nn.sigmoid(hp(ins, params["w_in"][1]) + params["b_in"][1]
                           + hp(agg, params["w_hid"][1]))
        n = jnp.tanh(hp(ins, params["w_in"][2]) + params["b_in"][2]
                     + r * hp(agg, params["w_hid"][2]))
        hidden = (1.0 - i) * n + i * hidden
        p = jax.nn.relu(hp(hidden, params["wo1"]) + params["bo1"])
        p = jax.nn.relu(hp(p, params["wo2"]) + params["bo2"])
        p = hp(p, params["wo3"]) + params["bo3"]
        preds.append(ins + p)
    return jnp.swapaxes(jnp.stack(preds, axis=1), 1, 2)             # [B,N,T-1,D]


# ------------------------------ parameter init -------------------------------
def init_params(key, n_in, n_hid, edge_types):
    keys = iter(jax.random.split(key, 4 * edge_types + 16))

    def linear(fan_in, fan_out, bias=True):     # PyTorch Linear-style uniform
        bound = 1.0 / float(fan_in) ** 0.5
        w = jax.random.uniform(next(keys), (fan_in, fan_out), jnp.float32,
                               -bound, bound)
        if not bias:
            return w
        b = jax.random.uniform(next(keys), (1, fan_out), jnp.float32,
                               -bound, bound)
        return w, b

    w1r, w1s, b1, w2, b2 = [], [], [], [], []
    for _ in range(edge_types):
        w, b = linear(2 * n_hid, n_hid)         # msg_fc1: split recv/send halves
        w1r.append(w[:n_hid]); w1s.append(w[n_hid:]); b1.append(b)
        w, b = linear(n_hid, n_hid)             # msg_fc2
        w2.append(w); b2.append(b)

    w_in, b_in = [], []
    for _ in range(3):                          # input_r, input_i, input_n
        w, b = linear(n_in, n_hid)
        w_in.append(w); b_in.append(b)
    w_hid = [linear(n_hid, n_hid, bias=False) for _ in range(3)]  # hidden_r,i,h

    wo1, bo1 = linear(n_hid, n_hid)
    wo2, bo2 = linear(n_hid, n_hid)
    wo3, bo3 = linear(n_hid, n_in)

    stk = lambda xs: jnp.stack(xs, axis=0)
    return dict(w1r=stk(w1r), w1s=stk(w1s), b1=stk(b1), w2=stk(w2), b2=stk(b2),
                w_in=stk(w_in), b_in=stk(b_in), w_hid=stk(w_hid),
                wo1=wo1, bo1=bo1, wo2=wo2, bo2=bo2, wo3=wo3, bo3=bo3)


# ----------------------------------- main ------------------------------------
if __name__ == "__main__":
    B, N, T, D = 2, 4, 8, 4                    # batch, atoms, timesteps, dims
    n_hid, edge_types = 32, 2
    E = N * (N - 1)

    key = jax.random.PRNGKey(0)
    k_data, k_rel, k_par = jax.random.split(key, 3)

    data = jax.random.normal(k_data, (B, N, T, D), jnp.float32)

    pairs = [(r, s) for r in range(N) for s in range(N) if r != s]
    rel_rec = jax.nn.one_hot(jnp.array([r for r, _ in pairs]), N,
                             dtype=jnp.float32)
    rel_send = jax.nn.one_hot(jnp.array([s for _, s in pairs]), N,
                              dtype=jnp.float32)
    rel_type = jax.nn.softmax(
        jax.random.normal(k_rel, (B, E, edge_types), jnp.float32), axis=-1)

    params = init_params(k_par, D, n_hid, edge_types)

    fwd = jax.jit(rnn_decoder_forward,
                  static_argnames=("pred_steps", "skip_first", "batch_block"))

    # teacher forcing (module defaults)
    out = jax.block_until_ready(fwd(params, data, rel_type, rel_rec, rel_send))
    assert out.shape == (B, N, T - 1, D), out.shape
    assert bool(jnp.all(jnp.isfinite(out)))
    ref = rnn_decoder_reference(params, data, rel_type, rel_rec, rel_send)
    max_err = float(jnp.max(jnp.abs(out - ref)))
    assert max_err < 1e-2, f"mismatch vs pure-JAX reference: {max_err}"

    # autoregressive feedback path (pred_steps > 1)
    out2 = jax.block_until_ready(
        fwd(params, data, rel_type, rel_rec, rel_send, pred_steps=2))
    ref2 = rnn_decoder_reference(params, data, rel_type, rel_rec, rel_send,
                                 pred_steps=2)
    max_err2 = float(jnp.max(jnp.abs(out2 - ref2)))
    assert max_err2 < 1e-2, f"autoregressive mismatch: {max_err2}"

    print("KERNEL_OK")
</pallas_src>

<mosaic_0001>
module attributes {stable_mosaic.version = 11 : i64} {
  func.func @_rnn_decoder_kernel(%arg0: i32, %arg1: memref<1x7x4x128xf32, #tpu.memory_space<vmem>>, %arg2: memref<1x12x2xf32, #tpu.memory_space<vmem>>, %arg3: memref<12x4xf32, #tpu.memory_space<vmem>>, %arg4: memref<12x4xf32, #tpu.memory_space<vmem>>, %arg5: memref<4x12xf32, #tpu.memory_space<vmem>>, %arg6: memref<32x64xf32, #tpu.memory_space<vmem>>, %arg7: memref<32x64xf32, #tpu.memory_space<vmem>>, %arg8: memref<1x64xf32, #tpu.memory_space<vmem>>, %arg9: memref<64x64xf32, #tpu.memory_space<vmem>>, %arg10: memref<1x64xf32, #tpu.memory_space<vmem>>, %arg11: memref<128x96xf32, #tpu.memory_space<vmem>>, %arg12: memref<1x96xf32, #tpu.memory_space<vmem>>, %arg13: memref<32x96xf32, #tpu.memory_space<vmem>>, %arg14: memref<32x32xf32, #tpu.memory_space<vmem>>, %arg15: memref<1x32xf32, #tpu.memory_space<vmem>>, %arg16: memref<32x32xf32, #tpu.memory_space<vmem>>, %arg17: memref<1x32xf32, #tpu.memory_space<vmem>>, %arg18: memref<32x128xf32, #tpu.memory_space<vmem>>, %arg19: memref<1x128xf32, #tpu.memory_space<vmem>>, %arg20: memref<1x7x4x128xf32, #tpu.memory_space<vmem>>) attributes {dimension_semantics = [#tpu.dimension_semantics<parallel>], iteration_bounds = array<i64: 2>, scalar_prefetch = 0 : i64, scratch_operands = 0 : i64, tpu.core_type = #tpu.core_type<tc>, window_params = [{transform_indices = @transform_0, window_bounds = array<i64: 1, 7, 4, 128>}, {transform_indices = @transform_1, window_bounds = array<i64: 1, 12, 2>}, {pipeline_mode = #tpu.pipeline_mode<synchronous>, transform_indices = @transform_2, window_bounds = array<i64: 12, 4>}, {pipeline_mode = #tpu.pipeline_mode<synchronous>, transform_indices = @transform_3, window_bounds = array<i64: 12, 4>}, {pipeline_mode = #tpu.pipeline_mode<synchronous>, transform_indices = @transform_4, window_bounds = array<i64: 4, 12>}, {pipeline_mode = #tpu.pipeline_mode<synchronous>, transform_indices = @transform_5, window_bounds = array<i64: 32, 64>}, {pipeline_mode = #tpu.pipeline_mode<synchronous>, transform_indices = @transform_6, window_bounds = array<i64: 32, 64>}, {pipeline_mode = #tpu.pipeline_mode<synchronous>, transform_indices = @transform_7, window_bounds = array<i64: 1, 64>}, {pipeline_mode = #tpu.pipeline_mode<synchronous>, transform_indices = @transform_8, window_bounds = array<i64: 64, 64>}, {pipeline_mode = #tpu.pipeline_mode<synchronous>, transform_indices = @transform_9, window_bounds = array<i64: 1, 64>}, {pipeline_mode = #tpu.pipeline_mode<synchronous>, transform_indices = @transform_10, window_bounds = array<i64: 128, 96>}, {pipeline_mode = #tpu.pipeline_mode<synchronous>, transform_indices = @transform_11, window_bounds = array<i64: 1, 96>}, {pipeline_mode = #tpu.pipeline_mode<synchronous>, transform_indices = @transform_12, window_bounds = array<i64: 32, 96>}, {pipeline_mode = #tpu.pipeline_mode<synchronous>, transform_indices = @transform_13, window_bounds = array<i64: 32, 32>}, {pipeline_mode = #tpu.pipeline_mode<synchronous>, transform_indices = @transform_14, window_bounds = array<i64: 1, 32>}, {pipeline_mode = #tpu.pipeline_mode<synchronous>, transform_indices = @transform_15, window_bounds = array<i64: 32, 32>}, {pipeline_mode = #tpu.pipeline_mode<synchronous>, transform_indices = @transform_16, window_bounds = array<i64: 1, 32>}, {pipeline_mode = #tpu.pipeline_mode<synchronous>, transform_indices = @transform_17, window_bounds = array<i64: 32, 128>}, {pipeline_mode = #tpu.pipeline_mode<synchronous>, transform_indices = @transform_18, window_bounds = array<i64: 1, 128>}, {transform_indices = @transform_19, window_bounds = array<i64: 1, 7, 4, 128>}]} {
    %c0 = arith.constant 0 : index
    %c0_0 = arith.constant 0 : index
    %0 = vector.load %arg3[%c0, %c0_0] : memref<12x4xf32, #tpu.memory_space<vmem>>, vector<12x4xf32>
    %c0_1 = arith.constant 0 : index
    %c0_2 = arith.constant 0 : index
    %1 = vector.load %arg4[%c0_1, %c0_2] : memref<12x4xf32, #tpu.memory_space<vmem>>, vector<12x4xf32>
    %c0_3 = arith.constant 0 : index
    %c0_4 = arith.constant 0 : index
    %2 = vector.load %arg5[%c0_3, %c0_4] : memref<4x12xf32, #tpu.memory_space<vmem>>, vector<4x12xf32>
    %c0_5 = arith.constant 0 : index
    %c0_6 = arith.constant 0 : index
    %c0_7 = arith.constant 0 : index
    %3 = vector.load %arg2[%c0_5, %c0_6, %c0_7] : memref<1x12x2xf32, #tpu.memory_space<vmem>>, vector<1x12x2xf32>
    %4 = vector.shape_cast %3 : vector<1x12x2xf32> to vector<12x2xf32>
    %c0_8 = arith.constant 0 : index
    %c0_9 = arith.constant 0 : index
    %5 = vector.load %arg6[%c0_8, %c0_9] : memref<32x64xf32, #tpu.memory_space<vmem>>, vector<32x64xf32>
    %c0_10 = arith.constant 0 : index
    %c0_11 = arith.constant 0 : index
    %6 = vector.load %arg7[%c0_10, %c0_11] : memref<32x64xf32, #tpu.memory_space<vmem>>, vector<32x64xf32>
    %c0_12 = arith.constant 0 : index
    %c0_13 = arith.constant 0 : index
    %7 = vector.load %arg8[%c0_12, %c0_13] : memref<1x64xf32, #tpu.memory_space<vmem>>, vector<1x64xf32>
    %c0_14 = arith.constant 0 : index
    %c0_15 = arith.constant 0 : index
    %8 = vector.load %arg9[%c0_14, %c0_15] : memref<64x64xf32, #tpu.memory_space<vmem>>, vector<64x64xf32>
    %c0_16 = arith.constant 0 : index
    %c0_17 = arith.constant 0 : index
    %9 = vector.load %arg10[%c0_16, %c0_17] : memref<1x64xf32, #tpu.memory_space<vmem>>, vector<1x64xf32>
    %c0_18 = arith.constant 0 : index
    %c0_19 = arith.constant 0 : index
    %10 = vector.load %arg11[%c0_18, %c0_19] : memref<128x96xf32, #tpu.memory_space<vmem>>, vector<128x96xf32>
    %c0_20 = arith.constant 0 : index
    %c0_21 = arith.constant 0 : index
    %11 = vector.load %arg12[%c0_20, %c0_21] : memref<1x96xf32, #tpu.memory_space<vmem>>, vector<1x96xf32>
    %c0_22 = arith.constant 0 : index
    %c0_23 = arith.constant 0 : index
    %12 = vector.load %arg13[%c0_22, %c0_23] : memref<32x96xf32, #tpu.memory_space<vmem>>, vector<32x96xf32>
    %c0_24 = arith.constant 0 : index
    %c0_25 = arith.constant 0 : index
    %13 = vector.load %arg14[%c0_24, %c0_25] : memref<32x32xf32, #tpu.memory_space<vmem>>, vector<32x32xf32>
    %c0_26 = arith.constant 0 : index
    %c0_27 = arith.constant 0 : index
    %14 = vector.load %arg15[%c0_26, %c0_27] : memref<1x32xf32, #tpu.memory_space<vmem>>, vector<1x32xf32>
    %c0_28 = arith.constant 0 : index
    %c0_29 = arith.constant 0 : index
    %15 = vector.load %arg16[%c0_28, %c0_29] : memref<32x32xf32, #tpu.memory_space<vmem>>, vector<32x32xf32>
    %c0_30 = arith.constant 0 : index
    %c0_31 = arith.constant 0 : index
    %16 = vector.load %arg17[%c0_30, %c0_31] : memref<1x32xf32, #tpu.memory_space<vmem>>, vector<1x32xf32>
    %c0_32 = arith.constant 0 : index
    %c0_33 = arith.constant 0 : index
    %17 = vector.load %arg18[%c0_32, %c0_33] : memref<32x128xf32, #tpu.memory_space<vmem>>, vector<32x128xf32>
    %c0_34 = arith.constant 0 : index
    %c0_35 = arith.constant 0 : index
    %18 = vector.load %arg19[%c0_34, %c0_35] : memref<1x128xf32, #tpu.memory_space<vmem>>, vector<1x128xf32>
    %cst = arith.constant 0.000000e+00 : f32
    %19 = vector.broadcast %cst : f32 to vector<4x32xf32>
    %c0_i32 = arith.constant 0 : i32
    %c7_i32 = arith.constant 7 : i32
    %20 = arith.addi %c0_i32, %c7_i32 : i32
    %c1_i32 = arith.constant 1 : i32
    %21 = scf.for %arg21 = %c0_i32 to %20 step %c1_i32 iter_args(%arg22 = %19) -> (vector<4x32xf32>)  : i32 {
      %c0_37 = arith.constant 0 : index
      %22 = arith.index_cast %arg21 : i32 to index
      %c0_38 = arith.constant 0 : index
      %c0_39 = arith.constant 0 : index
      %23 = vector.load %arg1[%c0_37, %22, %c0_38, %c0_39] : memref<1x7x4x128xf32, #tpu.memory_space<vmem>>, vector<1x1x4x128xf32>
      %24 = vector.shape_cast %23 : vector<1x1x4x128xf32> to vector<4x128xf32>
      %cst_40 = arith.constant dense<0.000000e+00> : vector<12x32xf32>
      %25 = tpu.matmul %0, %arg22, %cst_40 {dimension_numbers = #tpu.dot_dimension_numbers<[1], [0], [0], [1], [0, 0, 1, 1], [], []>} : vector<12x4xf32>, vector<4x32xf32>, vector<12x32xf32> -> vector<12x32xf32>
      %cst_41 = arith.constant dense<0.000000e+00> : vector<12x32xf32>
      %26 = tpu.matmul %1, %arg22, %cst_41 {dimension_numbers = #tpu.dot_dimension_numbers<[1], [0], [0], [1], [0, 0, 1, 1], [], []>} : vector<12x4xf32>, vector<4x32xf32>, vector<12x32xf32> -> vector<12x32xf32>
      %cst_42 = arith.constant dense<0.000000e+00> : vector<12x64xf32>
      %27 = tpu.matmul %25, %5, %cst_42 {dimension_numbers = #tpu.dot_dimension_numbers<[1], [0], [0], [1], [0, 0, 1, 1], [], []>} : vector<12x32xf32>, vector<32x64xf32>, vector<12x64xf32> -> vector<12x64xf32>
      %cst_43 = arith.constant dense<0.000000e+00> : vector<12x64xf32>
      %28 = tpu.matmul %26, %6, %cst_43 {dimension_numbers = #tpu.dot_dimension_numbers<[1], [0], [0], [1], [0, 0, 1, 1], [], []>} : vector<12x32xf32>, vector<32x64xf32>, vector<12x64xf32> -> vector<12x64xf32>
      %29 = arith.addf %27, %28 : vector<12x64xf32>
      %30 = vector.broadcast %7 : vector<1x64xf32> to vector<12x64xf32>
      %31 = arith.addf %29, %30 : vector<12x64xf32>
      %32 = math.tanh %31 : vector<12x64xf32>
      %cst_44 = arith.constant dense<0.000000e+00> : vector<12x64xf32>
      %33 = tpu.matmul %32, %8, %cst_44 {dimension_numbers = #tpu.dot_dimension_numbers<[1], [0], [0], [1], [0, 0, 1, 1], [], []>} : vector<12x64xf32>, vector<64x64xf32>, vector<12x64xf32> -> vector<12x64xf32>
      %34 = vector.broadcast %9 : vector<1x64xf32> to vector<12x64xf32>
      %35 = arith.addf %33, %34 : vector<12x64xf32>
      %36 = math.tanh %35 : vector<12x64xf32>
      %37 = vector.extract_strided_slice %36 {offsets = [0, 0], sizes = [12, 32], strides = [1, 1]} : vector<12x64xf32> to vector<12x32xf32>
      %38 = vector.extract_strided_slice %4 {offsets = [0, 0], sizes = [12, 1], strides = [1, 1]} : vector<12x2xf32> to vector<12x1xf32>
      %39 = vector.broadcast %38 : vector<12x1xf32> to vector<12x32xf32>
      %40 = arith.mulf %37, %39 : vector<12x32xf32>
      %41 = vector.extract_strided_slice %36 {offsets = [0, 32], sizes = [12, 32], strides = [1, 1]} : vector<12x64xf32> to vector<12x32xf32>
      %42 = vector.extract_strided_slice %4 {offsets = [0, 1], sizes = [12, 1], strides = [1, 1]} : vector<12x2xf32> to vector<12x1xf32>
      %43 = vector.broadcast %42 : vector<12x1xf32> to vector<12x32xf32>
      %44 = arith.mulf %41, %43 : vector<12x32xf32>
      %45 = arith.addf %40, %44 : vector<12x32xf32>
      %cst_45 = arith.constant dense<0.000000e+00> : vector<4x32xf32>
      %46 = tpu.matmul %2, %45, %cst_45 {dimension_numbers = #tpu.dot_dimension_numbers<[1], [0], [0], [1], [0, 0, 1, 1], [], []>} : vector<4x12xf32>, vector<12x32xf32>, vector<4x32xf32> -> vector<4x32xf32>
      %cst_46 = arith.constant dense<0.000000e+00> : vector<4x96xf32>
      %47 = tpu.matmul %24, %10, %cst_46 {dimension_numbers = #tpu.dot_dimension_numbers<[1], [0], [0], [1], [0, 0, 1, 1], [], []>} : vector<4x128xf32>, vector<128x96xf32>, vector<4x96xf32> -> vector<4x96xf32>
      %48 = vector.broadcast %11 : vector<1x96xf32> to vector<4x96xf32>
      %49 = arith.addf %47, %48 : vector<4x96xf32>
      %cst_47 = arith.constant dense<0.000000e+00> : vector<4x96xf32>
      %50 = tpu.matmul %46, %12, %cst_47 {dimension_numbers = #tpu.dot_dimension_numbers<[1], [0], [0], [1], [0, 0, 1, 1], [], []>} : vector<4x32xf32>, vector<32x96xf32>, vector<4x96xf32> -> vector<4x96xf32>
      %51 = vector.extract_strided_slice %49 {offsets = [0, 0], sizes = [4, 32], strides = [1, 1]} : vector<4x96xf32> to vector<4x32xf32>
      %52 = vector.extract_strided_slice %50 {offsets = [0, 0], sizes = [4, 32], strides = [1, 1]} : vector<4x96xf32> to vector<4x32xf32>
      %53 = arith.addf %51, %52 : vector<4x32xf32>
      %54 = arith.negf %53 : vector<4x32xf32>
      %55 = math.exp %54 : vector<4x32xf32>
      %cst_48 = arith.constant 1.000000e+00 : f32
      %56 = vector.broadcast %cst_48 : f32 to vector<4x32xf32>
      %57 = arith.addf %56, %55 : vector<4x32xf32>
      %58 = arith.divf %56, %57 : vector<4x32xf32>
      %59 = vector.extract_strided_slice %49 {offsets = [0, 32], sizes = [4, 32], strides = [1, 1]} : vector<4x96xf32> to vector<4x32xf32>
      %60 = vector.extract_strided_slice %50 {offsets = [0, 32], sizes = [4, 32], strides = [1, 1]} : vector<4x96xf32> to vector<4x32xf32>
      %61 = arith.addf %59, %60 : vector<4x32xf32>
      %62 = arith.negf %61 : vector<4x32xf32>
      %63 = math.exp %62 : vector<4x32xf32>
      %cst_49 = arith.constant 1.000000e+00 : f32
      %64 = vector.broadcast %cst_49 : f32 to vector<4x32xf32>
      %65 = arith.addf %64, %63 : vector<4x32xf32>
      %66 = arith.divf %64, %65 : vector<4x32xf32>
      %67 = vector.extract_strided_slice %49 {offsets = [0, 64], sizes = [4, 32], strides = [1, 1]} : vector<4x96xf32> to vector<4x32xf32>
      %68 = vector.extract_strided_slice %50 {offsets = [0, 64], sizes = [4, 32], strides = [1, 1]} : vector<4x96xf32> to vector<4x32xf32>
      %69 = arith.mulf %58, %68 : vector<4x32xf32>
      %70 = arith.addf %67, %69 : vector<4x32xf32>
      %71 = math.tanh %70 : vector<4x32xf32>
      %cst_50 = arith.constant 1.000000e+00 : f32
      %72 = vector.broadcast %cst_50 : f32 to vector<4x32xf32>
      %73 = arith.subf %72, %66 : vector<4x32xf32>
      %74 = arith.mulf %73, %71 : vector<4x32xf32>
      %75 = arith.mulf %66, %arg22 : vector<4x32xf32>
      %76 = arith.addf %74, %75 : vector<4x32xf32>
      %cst_51 = arith.constant dense<0.000000e+00> : vector<4x32xf32>
      %77 = tpu.matmul %76, %13, %cst_51 {dimension_numbers = #tpu.dot_dimension_numbers<[1], [0], [0], [1], [0, 0, 1, 1], [], []>} : vector<4x32xf32>, vector<32x32xf32>, vector<4x32xf32> -> vector<4x32xf32>
      %78 = vector.broadcast %14 : vector<1x32xf32> to vector<4x32xf32>
      %79 = arith.addf %77, %78 : vector<4x32xf32>
      %cst_52 = arith.constant 0.000000e+00 : f32
      %80 = vector.broadcast %cst_52 : f32 to vector<4x32xf32>
      %81 = arith.maximumf %79, %80 : vector<4x32xf32>
      %cst_53 = arith.constant dense<0.000000e+00> : vector<4x32xf32>
      %82 = tpu.matmul %81, %15, %cst_53 {dimension_numbers = #tpu.dot_dimension_numbers<[1], [0], [0], [1], [0, 0, 1, 1], [], []>} : vector<4x32xf32>, vector<32x32xf32>, vector<4x32xf32> -> vector<4x32xf32>
      %83 = vector.broadcast %16 : vector<1x32xf32> to vector<4x32xf32>
      %84 = arith.addf %82, %83 : vector<4x32xf32>
      %cst_54 = arith.constant 0.000000e+00 : f32
      %85 = vector.broadcast %cst_54 : f32 to vector<4x32xf32>
      %86 = arith.maximumf %84, %85 : vector<4x32xf32>
      %cst_55 = arith.constant dense<0.000000e+00> : vector<4x128xf32>
      %87 = tpu.matmul %86, %17, %cst_55 {dimension_numbers = #tpu.dot_dimension_numbers<[1], [0], [0], [1], [0, 0, 1, 1], [], []>} : vector<4x32xf32>, vector<32x128xf32>, vector<4x128xf32> -> vector<4x128xf32>
      %88 = vector.broadcast %18 : vector<1x128xf32> to vector<4x128xf32>
      %89 = arith.addf %87, %88 : vector<4x128xf32>
      %90 = arith.addf %24, %89 : vector<4x128xf32>
      %c0_56 = arith.constant 0 : index
      %91 = arith.index_cast %arg21 : i32 to index
      %c0_57 = arith.constant 0 : index
      %c0_58 = arith.constant 0 : index
      %92 = vector.load %arg20[%c0_56, %91, %c0_57, %c0_58] : memref<1x7x4x128xf32, #tpu.memory_space<vmem>>, vector<1x1x4x128xf32>
      %93 = vector.shape_cast %92 : vector<1x1x4x128xf32> to vector<4x128xf32>
      %94 = vector.shape_cast %90 : vector<4x128xf32> to vector<1x1x4x128xf32>
      tpu.vector_store %arg20[%c0_56, %91, %c0_57, %c0_58], %94 {strides = array<i32>} : memref<1x7x4x128xf32, #tpu.memory_space<vmem>>, vector<1x1x4x128xf32>,
      scf.yield %76 : vector<4x32xf32>
    }
    %c7_i32_36 = arith.constant 7 : i32
    return
  }
  func.func @transform_0(%arg0: i32) -> (i32, i32, i32, i32) {
    %c0_i32 = arith.constant 0 : i32
    %c0_i32_0 = arith.constant 0 : i32
    %c0_i32_1 = arith.constant 0 : i32
    %c0_i32_2 = arith.constant 0 : i32
    return %arg0, %c0_i32, %c0_i32_0, %c0_i32_1 : i32, i32, i32, i32
  }
  func.func @transform_1(%arg0: i32) -> (i32, i32, i32) {
    %c0_i32 = arith.constant 0 : i32
    %c0_i32_0 = arith.constant 0 : i32
    %c0_i32_1 = arith.constant 0 : i32
    return %arg0, %c0_i32, %c0_i32_0 : i32, i32, i32
  }
  func.func @transform_2(%arg0: i32) -> (i32, i32) {
    %c0_i32 = arith.constant 0 : i32
    %c0_i32_0 = arith.constant 0 : i32
    %c0_i32_1 = arith.constant 0 : i32
    return %c0_i32, %c0_i32_0 : i32, i32
  }
  func.func @transform_3(%arg0: i32) -> (i32, i32) {
    %c0_i32 = arith.constant 0 : i32
    %c0_i32_0 = arith.constant 0 : i32
    %c0_i32_1 = arith.constant 0 : i32
    return %c0_i32, %c0_i32_0 : i32, i32
  }
  func.func @transform_4(%arg0: i32) -> (i32, i32) {
    %c0_i32 = arith.constant 0 : i32
    %c0_i32_0 = arith.constant 0 : i32
    %c0_i32_1 = arith.constant 0 : i32
    return %c0_i32, %c0_i32_0 : i32, i32
  }
  func.func @transform_5(%arg0: i32) -> (i32, i32) {
    %c0_i32 = arith.constant 0 : i32
    %c0_i32_0 = arith.constant 0 : i32
    %c0_i32_1 = arith.constant 0 : i32
    return %c0_i32, %c0_i32_0 : i32, i32
  }
  func.func @transform_6(%arg0: i32) -> (i32, i32) {
    %c0_i32 = arith.constant 0 : i32
    %c0_i32_0 = arith.constant 0 : i32
    %c0_i32_1 = arith.constant 0 : i32
    return %c0_i32, %c0_i32_0 : i32, i32
  }
  func.func @transform_7(%arg0: i32) -> (i32, i32) {
    %c0_i32 = arith.constant 0 : i32
    %c0_i32_0 = arith.constant 0 : i32
    %c0_i32_1 = arith.constant 0 : i32
    return %c0_i32, %c0_i32_0 : i32, i32
  }
  func.func @transform_8(%arg0: i32) -> (i32, i32) {
    %c0_i32 = arith.constant 0 : i32
    %c0_i32_0 = arith.constant 0 : i32
    %c0_i32_1 = arith.constant 0 : i32
    return %c0_i32, %c0_i32_0 : i32, i32
  }
  func.func @transform_9(%arg0: i32) -> (i32, i32) {
    %c0_i32 = arith.constant 0 : i32
    %c0_i32_0 = arith.constant 0 : i32
    %c0_i32_1 = arith.constant 0 : i32
    return %c0_i32, %c0_i32_0 : i32, i32
  }
  func.func @transform_10(%arg0: i32) -> (i32, i32) {
    %c0_i32 = arith.constant 0 : i32
    %c0_i32_0 = arith.constant 0 : i32
    %c0_i32_1 = arith.constant 0 : i32
    return %c0_i32, %c0_i32_0 : i32, i32
  }
  func.func @transform_11(%arg0: i32) -> (i32, i32) {
    %c0_i32 = arith.constant 0 : i32
    %c0_i32_0 = arith.constant 0 : i32
    %c0_i32_1 = arith.constant 0 : i32
    return %c0_i32, %c0_i32_0 : i32, i32
  }
  func.func @transform_12(%arg0: i32) -> (i32, i32) {
    %c0_i32 = arith.constant 0 : i32
    %c0_i32_0 = arith.constant 0 : i32
    %c0_i32_1 = arith.constant 0 : i32
    return %c0_i32, %c0_i32_0 : i32, i32
  }
  func.func @transform_13(%arg0: i32) -> (i32, i32) {
    %c0_i32 = arith.constant 0 : i32
    %c0_i32_0 = arith.constant 0 : i32
    %c0_i32_1 = arith.constant 0 : i32
    return %c0_i32, %c0_i32_0 : i32, i32
  }
  func.func @transform_14(%arg0: i32) -> (i32, i32) {
    %c0_i32 = arith.constant 0 : i32
    %c0_i32_0 = arith.constant 0 : i32
    %c0_i32_1 = arith.constant 0 : i32
    return %c0_i32, %c0_i32_0 : i32, i32
  }
  func.func @transform_15(%arg0: i32) -> (i32, i32) {
    %c0_i32 = arith.constant 0 : i32
    %c0_i32_0 = arith.constant 0 : i32
    %c0_i32_1 = arith.constant 0 : i32
    return %c0_i32, %c0_i32_0 : i32, i32
  }
  func.func @transform_16(%arg0: i32) -> (i32, i32) {
    %c0_i32 = arith.constant 0 : i32
    %c0_i32_0 = arith.constant 0 : i32
    %c0_i32_1 = arith.constant 0 : i32
    return %c0_i32, %c0_i32_0 : i32, i32
  }
  func.func @transform_17(%arg0: i32) -> (i32, i32) {
    %c0_i32 = arith.constant 0 : i32
    %c0_i32_0 = arith.constant 0 : i32
    %c0_i32_1 = arith.constant 0 : i32
    return %c0_i32, %c0_i32_0 : i32, i32
  }
  func.func @transform_18(%arg0: i32) -> (i32, i32) {
    %c0_i32 = arith.constant 0 : i32
    %c0_i32_0 = arith.constant 0 : i32
    %c0_i32_1 = arith.constant 0 : i32
    return %c0_i32, %c0_i32_0 : i32, i32
  }
  func.func @transform_19(%arg0: i32) -> (i32, i32, i32, i32) {
    %c0_i32 = arith.constant 0 : i32
    %c0_i32_0 = arith.constant 0 : i32
    %c0_i32_1 = arith.constant 0 : i32
    %c0_i32_2 = arith.constant 0 : i32
    return %arg0, %c0_i32, %c0_i32_0, %c0_i32_1 : i32, i32, i32, i32
  }
}

</mosaic_0001>

<bundles_post_ra>
// kernel: rnn_decoder_forward.1
= control target key start
LH: loop header
LB: loop body
LE: loop exit
PB: predicated region body
PF: predicated region fallthrough
CT: control target
= control target key end

     0   :  { %s2707_s0 = inlined_call_operand.vmem [shape: f32[2,7,4,128], index: 0, kind: input, shape index: {}]   ;;  %s2708_s1 = inlined_call_operand.vmem [shape: f32[2,12,2], index: 1, kind: input, shape index: {}]   ;;  %s2709_s2 = inlined_call_operand.vmem [shape: f32[12,4], index: 2, kind: input, shape index: {}]   ;;  %s2710_s3 = inlined_call_operand.vmem [shape: f32[12,4], index: 3, kind: input, shape index: {}]   ;;  %s2711_s4 = inlined_call_operand.vmem [shape: f32[4,12], index: 4, kind: input, shape index: {}]   ;;  %s2712_s5 = inlined_call_operand.vmem [shape: f32[32,64], index: 5, kind: input, shape index: {}]   ;;  %s2713_s6 = inlined_call_operand.vmem [shape: f32[32,64], index: 6, kind: input, shape index: {}]   ;;  %s2714_s7 = inlined_call_operand.vmem [shape: f32[1,64], index: 7, kind: input, shape index: {}]   ;;  %s2715_s8 = inlined_call_operand.vmem [shape: f32[64,64], index: 8, kind: input, shape index: {}]   ;;  %s2716_s9 = inlined_call_operand.vmem [shape: f32[1,64], index: 9, kind: input, shape index: {}]   ;;  %s2717_s10 = inlined_call_operand.vmem [shape: f32[128,96], index: 10, kind: input, shape index: {}]   ;;  %s2718_s11 = inlined_call_operand.vmem [shape: f32[1,96], index: 11, kind: input, shape index: {}]   ;;  %s2719_s12 = inlined_call_operand.vmem [shape: f32[32,96], index: 12, kind: input, shape index: {}]   ;;  %s2720_s13 = inlined_call_operand.vmem [shape: f32[32,32], index: 13, kind: input, shape index: {}]   ;;  %s2721_s14 = inlined_call_operand.vmem [shape: f32[1,32], index: 14, kind: input, shape index: {}]   ;;  %s2722_s15 = inlined_call_operand.vmem [shape: f32[32,32], index: 15, kind: input, shape index: {}]   ;;  %s2723_s16 = inlined_call_operand.vmem [shape: f32[1,32], index: 16, kind: input, shape index: {}]   ;;  %s2724_s17 = inlined_call_operand.vmem [shape: f32[32,128], index: 17, kind: input, shape index: {}]   ;;  %s2725_s18 = inlined_call_operand.vmem [shape: f32[1,128], index: 18, kind: input, shape index: {}]   ;;  %s2726_s19 = inlined_call_operand.vmem [shape: f32[2,7,4,128], index: 19, kind: output, shape index: {}]  }
   0x1   :  { %2734 = sst [smem:[#allocation16_spill]] %s2707_s0  ;;  %s2244_s0 = smov 0  }
   0x2   :  { %2735 = sst [smem:[#allocation17_spill]] %s2708_s1 }
   0x3   :  { %2736 = sst [smem:[#allocation18_spill]] %s2709_s2 }
   0x4   :  { %2737 = sst [smem:[#allocation19_spill]] %s2710_s3 }
   0x5   :  { %2738 = sst [smem:[#allocation20_spill]] %s2711_s4 }
   0x6   :  { %2739 = sst [smem:[#allocation21_spill]] %s2712_s5 }
   0x7 LB: > { %s1733_s30 = sadd.s32 4294967295, %s2126_s0   ;;  %p1737_p0 = scmp.ge.s32.totalorder %s2126_s0, 1  ;;  %s2126_s0 = sphi %s2244_s0, %s29_s0  }
   0x8   : > { %p547_p1 = scmp.lt.s32.totalorder %s2126_s0, 3 }
   0xa   : > { %p548_p2 = pnand %p1737_p0, %p547_p1 }
   0xb   : > { %p608_p3 = scmp.lt.s32.totalorder (!%p548_p2), %s1733_s30, 1  ;;  %s2740_s1 = sld [smem:[#allocation18_spill]] (!%p548_p2)  ;;  %v2300_v9 = vld [vmem:[%s2713_s6] sm:$0xff] (!%p548_p2)  ;;  %v2305_v10 = vld [vmem:[%s2713_s6 + $0x8] sm:$0xff] (!%p548_p2)  ;;  %v2310_v11 = vld [vmem:[%s2713_s6 + $0x10] sm:$0xff] (!%p548_p2)  ;;  %v2564_v61 = vmov (!%p548_p2), 0.0  }
   0xc   : > { %551 = sbr.rel (%p548_p2) target bundleno = 2506 (0x9ca), region = 96  ;;  %s2743_s25 = sld [smem:[#allocation19_spill]] (!%p548_p2)  ;;  %2753 = vst [vmem:[#allocation11_spill] sm:$0xff] (!%p548_p2), %v2300_v9  ;;  %2754 = vst [vmem:[#allocation12_spill] sm:$0xff] (!%p548_p2), %v2305_v10  ;;  %v2315_v12 = vld [vmem:[%s2713_s6 + $0x18] sm:$0xff] (!%p548_p2)  ;;  %v2325_v14 = vld [vmem:[%s2715_s8] sm:$0xff] (!%p548_p2) }
   0xd   : > { %s2746_s4 = sld [smem:[#allocation20_spill]] (!%p548_p2)  ;;  %s2748_s5 = sld [smem:[#allocation21_spill]] (!%p548_p2)  ;;  %2755 = vst [vmem:[#allocation13_spill] sm:$0xff] (!%p548_p2), %v2310_v11  ;;  %2756 = vst [vmem:[#allocation14_spill] sm:$0xff] (!%p548_p2), %v2315_v12  ;;  %v2320_v13 = vld [vmem:[%s2714_s7] ss:$0 sm:$0xff] (!%p548_p2) }
   0xe   : > { %s2757_s21 = sld [smem:[#allocation17_spill]] (!%p548_p2)  ;;  %v2333_v15 = vld [vmem:[%s2715_s8 + $0x8] sm:$0xff] (!%p548_p2)  ;;  %v2338_v16 = vld [vmem:[%s2715_s8 + $0x10] sm:$0xff] (!%p548_p2)  ;;  %v2343_v17 = vld [vmem:[%s2715_s8 + $0x18] sm:$0xff] (!%p548_p2) }
   0xf   : > { %v2362_v20 = vld [vmem:[%s2715_s8 + $0x20] sm:$0xff] (!%p548_p2)  ;;  %v2367_v21 = vld [vmem:[%s2715_s8 + $0x28] sm:$0xff] (!%p548_p2)  ;;  %v2372_v22 = vld [vmem:[%s2715_s8 + $0x30] sm:$0xff] (!%p548_p2) }
  0x10   : > { %v2377_v23 = vld [vmem:[%s2715_s8 + $0x38] sm:$0xff] (!%p548_p2)  ;;  %v2382_v24 = vld [vmem:[%s2716_s9] ss:$0 sm:$0xff] (!%p548_p2)  ;;  %v2392_v26 = vld [vmem:[%s2717_s10 + $0x8] sm:$0xff] (!%p548_p2) }
  0x11   : > { %v2255_v0 = vld [vmem:[%s2740_s1] sm:$0xff] (!%p548_p2)  ;;  %v2260_v1 = vld [vmem:[%s2740_s1 + $0x8] sm:$0xf] (!%p548_p2)  ;;  %v2397_v27 = vld [vmem:[%s2717_s10 + $0x10] sm:$0xff] (!%p548_p2) }
  0x12   : > { %2741 = vst [vmem:[#allocation2_spill] sm:$0xff] (!%p548_p2), %v2255_v0  ;;  %2742 = vst [vmem:[#allocation3_spill] sm:$0xff] (!%p548_p2), %v2260_v1  ;;  %v2265_v2 = vld [vmem:[%s2743_s25] sm:$0xff] (!%p548_p2)  ;;  %v2270_v3 = vld [vmem:[%s2743_s25 + $0x8] sm:$0xf] (!%p548_p2) }
  0x13   : > { %2744 = vst [vmem:[#allocation4_spill] sm:$0xff] %v2265_v2  ;;  %2745 = vst [vmem:[#allocation5_spill] sm:$0xff] %v2270_v3  ;;  %v2275_v4 = vld [vmem:[%s2746_s4] sm:$0xf]  ;;  %s2777_s30 = smov (!%p608_p3, %s1733_s30), 1  ;;  %v2285_v6 = vld [vmem:[%s2748_s5 + $0x8] sm:$0xff] }
  0x14   : > { %2747 = vst [vmem:[#allocation6_spill] sm:$0xff] %v2275_v4  ;;  %v2280_v5 = vld [vmem:[%s2748_s5] sm:$0xff]  ;;  %2750 = vst [vmem:[#allocation8_spill] sm:$0xff] %v2285_v6  ;;  %v2290_v7 = vld [vmem:[%s2748_s5 + $0x10] sm:$0xff]  ;;  %s2062_s22 = smul.u32 28, %s2777_s30  ;;  %s1770_s2 = sshll.u32 %s2777_s30, 4 }
  0x15   : > { %2749 = vst [vmem:[#allocation7_spill] sm:$0xff] %v2280_v5  ;;  %2751 = vst [vmem:[#allocation9_spill] sm:$0xff] %v2290_v7  ;;  %v2295_v8 = vld [vmem:[%s2748_s5 + $0x18] sm:$0xff]  ;;  %s617_s1 = scalar_lea.vmem %s2757_s21, %s1770_s2  ;;  %s2758_s5 = sld [smem:[#allocation16_spill]]  ;;  %v2387_v25 = vld [vmem:[%s2717_s10] sm:$0xff] }
  0x16   : > { %2752 = vst [vmem:[#allocation10_spill] sm:$0xff] %v2295_v8  ;;  %s2353_s4 = scalar_lea.vmem %s2726_s19, %s2062_s22  ;;  %v2355_v18 = vld [vmem:[%s617_s1] sm:$0xff]  ;;  %v2357_v19 = vld [vmem:[%s617_s1 + $0x8] sm:$0xf]  ;;  %v2402_v28 = vld [vmem:[%s2717_s10 + $0x18] sm:$0xff] }
  0x17   : > { %v2407_v29 = vld [vmem:[%s2717_s10 + $0x20] sm:$0xff]  ;;  %v2412_v30 = vld [vmem:[%s2717_s10 + $0x28] sm:$0xff]  ;;  %v2417_v31 = vld [vmem:[%s2717_s10 + $0x30] sm:$0xff] }
  0x18   : > { %v2422_v32 = vld [vmem:[%s2717_s10 + $0x38] sm:$0xff]  ;;  %v2427_v33 = vld [vmem:[%s2717_s10 + $0x40] sm:$0xff]  ;;  %v2432_v34 = vld [vmem:[%s2717_s10 + $0x48] sm:$0xff] }
  0x19   : > { %v2437_v35 = vld [vmem:[%s2717_s10 + $0x50] sm:$0xff]  ;;  %v2442_v36 = vld [vmem:[%s2717_s10 + $0x58] sm:$0xff]  ;;  %v2447_v37 = vld [vmem:[%s2717_s10 + $0x60] sm:$0xff] }
  0x1a   : > { %v2452_v38 = vld [vmem:[%s2717_s10 + $0x68] sm:$0xff]  ;;  %v2457_v39 = vld [vmem:[%s2717_s10 + $0x70] sm:$0xff]  ;;  %v2462_v40 = vld [vmem:[%s2717_s10 + $0x78] sm:$0xff] }
  0x1b   : > { %s2348_s29 = scalar_lea.vmem %s2758_s5, %s2062_s22  ;;  %v2467_v41 = vld [vmem:[%s2718_s11] ss:$0 sm:$0xff]  ;;  %v2477_v43 = vld [vmem:[%s2719_s12 + $0x8] sm:$0xff]  ;;  %v2482_v44 = vld [vmem:[%s2719_s12 + $0x10] sm:$0xff]  ;;  %s2566_s5 = smov 0  }
  0x1c   : > { %v2472_v42 = vld [vmem:[%s2719_s12] sm:$0xff]  ;;  %v2487_v45 = vld [vmem:[%s2719_s12 + $0x18] sm:$0xff]  ;;  %v2497_v47 = vld [vmem:[%s2720_s13 + $0x8] sm:$0xff] }
  0x1d   : > { %v2492_v46 = vld [vmem:[%s2720_s13] sm:$0xff]  ;;  %v2502_v48 = vld [vmem:[%s2720_s13 + $0x10] sm:$0xff]  ;;  %v2507_v49 = vld [vmem:[%s2720_s13 + $0x18] sm:$0xff] }
  0x1e   : > { %v2512_v50 = vld [vmem:[%s2721_s14] ss:$0 sm:$0xff]  ;;  %v2522_v52 = vld [vmem:[%s2722_s15 + $0x8] sm:$0xff]  ;;  %v2527_v53 = vld [vmem:[%s2722_s15 + $0x10] sm:$0xff] }
  0x1f   : > { %v2517_v51 = vld [vmem:[%s2722_s15] sm:$0xff]  ;;  %v2532_v54 = vld [vmem:[%s2722_s15 + $0x18] sm:$0xff]  ;;  %v2547_v57 = vld [vmem:[%s2724_s17 + $0x8] sm:$0xff] }
  0x20   : > { %v2537_v55 = vld [vmem:[%s2723_s16] ss:$0 sm:$0xff]  ;;  %v2552_v58 = vld [vmem:[%s2724_s17 + $0x10] sm:$0xff]  ;;  %v2557_v59 = vld [vmem:[%s2724_s17 + $0x18] sm:$0xff] }
  0x21   : > { %v2542_v56 = vld [vmem:[%s2724_s17] sm:$0xff] }
  0x22   : > { %v2562_v60 = vld [vmem:[%s2725_s18] ss:$0 sm:$0xff] }
  0x23   : > { %2759 = vst [vmem:[#allocation15_spill] sm:$0xff] %v2562_v60 }
  0x24 LB: >> { %vm697_vm0 = vcmask 31744   ;;  %v2760_v2 = vld [vmem:[#allocation4_spill] sm:$0xff]  ;;  %v2761_v0 = vld [vmem:[#allocation2_spill] sm:$0xff]  ;;  %s2136_s3 = smov 96   ;;  %vm704_vm1 = vcmask 1043456   ;;  %v2762_v9 = vld [vmem:[#allocation11_spill] sm:$0xff]  ;;  %s2134_s5 = sphi %s2566_s5, %s689_s5   ;;  %v2130_v61 = vphi %v2564_v61, %v1409_v61  }
  0x25   : >> { %1846 = vmatprep.mubr.msk.f32.mxu1 %vm697_vm0, %v2760_v2  ;;  %1841 = vmatprep.mubr.msk.f32.mxu0 %vm697_vm0, %v2761_v0  ;;  %v2763_v10 = vld [vmem:[#allocation12_spill] sm:$0xff]  ;;  %v2764_v11 = vld [vmem:[#allocation13_spill] sm:$0xff]  ;;  %v2765_v12 = vld [vmem:[#allocation14_spill] sm:$0xff]  ;;  %vm863_vm2 = vcmask 261120   ;;  %vm1042_vm3 = vcmask 523264   ;;  %vm2140_vm4 = vmmov 0  }
  0x26   : >> { %695 = vrot.lane.b32.xlu0 %v2130_v61, %s2136_s3  ;;  %v1976_v63 = vpack.c.bf16 %v2763_v10, %v2762_v9  ;;  %v1980_v0 = vpack.c.bf16 %v2765_v12, %v2764_v11  ;;  %v2766_v3 = vld [vmem:[#allocation5_spill] sm:$0xff]  ;;  %v2767_v1 = vld [vmem:[#allocation3_spill] sm:$0xff]  ;;  %v2769_v6 = vld [vmem:[#allocation8_spill] sm:$0xff]  ;;  %vm2142_vm5 = vmmov 1   ;;  %vm1158_vm7 = vcmask 97280   ;;  %s1742_s22 = sshll.u32 %s2134_s5, 2 }
  0x27   : >> { %v2768_v5 = vld [vmem:[#allocation7_spill] sm:$0xff]  ;;  %v2770_v7 = vld [vmem:[#allocation9_spill] sm:$0xff]  ;;  %v2771_v8 = vld [vmem:[#allocation10_spill] sm:$0xff]  ;;  %s692_s26 = scalar_lea.vmem %s2348_s29, %s1742_s22  ;;  %s2143_s1 = smov 64  }
  0x28   : >> { %v1984_v2 = vpack.c.bf16 %v2769_v6, %v2768_v5  ;;  %v2732_v5 = vmov 0.0|0.0   ;;  %vm2010_vm6 = vmpackc.low %vm704_vm1, %vm2142_vm5  ;;  %v2772_v4 = vld [vmem:[#allocation6_spill] sm:$0xff]  ;;  %s1652_s27 = scalar_lea.vmem %s2353_s4, %s1742_s22  ;;  %s689_s5 = sadd.s32 1, %s2134_s5  }
  0x29   : >> { %p686_p4 = scmp.ge.s32.totalorder %s689_s5, 7  }
  0x98   : >> { %v696_v62 = vpop.permute.xlu0 %695 }
  0x99   : >> { %1839 = vmatprep.subr.msk.mxu0 %vm704_vm1, %v696_v62  ;;  %1844 = vmatprep.subr.msk.mxu1 %vm704_vm1, %v696_v62 }
  0x9a   : >> { %1840 = vmatpush3.msk.msra.mxu0 %vm704_vm1, %v696_v62  ;;  %1845 = vmatpush3.msk.msra.mxu1 %vm704_vm1, %v696_v62  ;;  %v1988_v62 = vpack.c.bf16 %v2771_v8, %v2770_v7 }
  0x9b   : >> { %1847 = vmatmul.mubr.msk.f32.vlgmr.msra.gmra.mrb[0].mxu1 %vm697_vm0, %v2766_v3  ;;  %1842 = vmatmul.mubr.msk.f32.vlgmr.msra.gmra.mrb[0].mxu0 %vm697_vm0, %v2767_v1 }
  0x9c   : >> { %1977 = vmatprep.subr.bf16.mxu0 %v1976_v63 }
  0x9d   : >> { %1979 = vmatpush3.bf16.msra.mxu0 %v1976_v63  ;;  %v1996_v63 = vpack.c.bf16 %v2343_v17, %v2338_v16 }
  0x9e   : >> { %1981 = vmatprep.subr.bf16.mxu0 %v1980_v0 }
  0xa1   : >> { %1983 = vmatpush3.bf16.msra.mxu0 %v1980_v0  ;;  %v1992_v0 = vpack.c.bf16 %v2333_v15, %v2325_v14 }
  0xa2   : >> { %1985 = vmatprep.subr.bf16.mxu0 %v1984_v2 }
  0xa3   : >> { %1993 = vmatprep.subr.bf16.mxu1 %v1992_v0 }
  0xa4   : >> { %1995 = vmatpush3.bf16.msra.mxu1 %v1992_v0 }
  0xa5   : >> { %1997 = vmatprep.subr.bf16.mxu1 %v1996_v63 }
  0xa8   : >> { %1999 = vmatpush3.bf16.msra.mxu1 %v1996_v63 }
 0x16e   : >> { %v1848_v9 = vpop.f32.mrb[0].mxu1  ;;  %v1843_v10 = vpop.f32.mrb[0].mxu0 }
 0x16f   : >> { %v854_v60 = vpop.f32.mrb[1].mxu1  ;;  %v773_v11 = vpop.f32.mrb[1].mxu0 }
 0x170   : >> { %1857 = vmatprep.mubr.msk.f32.mxu0 %vm863_vm2, %v854_v60  ;;  %v2000_v60 = vpack.c.bf16 %v2367_v21, %v2362_v20 }
 0x171   : >> { %1858 = vmatmul.mubr.msk.f32.vlgmr.msra.gmra.mrb[2].mxu0 %vm863_vm2, %v1848_v9  ;;  %v2137_v9 = vmov 1  }
 0x172   : >> { %1987 = vmatpush3.bf16.msra.mxu0 %v1984_v2  ;;  %1868 = vmatprep.mubr.msk.f32.mxu0 %vm863_vm2, %v773_v11  ;;  %v2004_v2 = vpack.c.bf16 %v2377_v23, %v2372_v22 }
 0x173   : >> { %1989 = vmatprep.subr.bf16.mxu0 %v1988_v62  ;;  %2001 = vmatprep.subr.bf16.mxu1 %v2000_v60 }
 0x174   : >> { %2003 = vmatpush3.bf16.msra.mxu1 %v2000_v60  ;;  %2096 = vset.pattern.permute.xlu1 %v2137_v9 }
 0x175   : >> { %2005 = vmatprep.subr.bf16.mxu1 %v2004_v2  ;;  %2095 = vset.pattern.permute.xlu0 %v2137_v9 }
 0x176   : >> { %1991 = vmatpush3.bf16.msra.mxu0 %v1988_v62  ;;  %1143 = vperm.xlu1 %2096, %v2357_v19  }
 0x177   : >> { %1139 = vperm.xlu0 %2095, %v2355_v18   ;;  %2008 = vmatprep.subr.bf16.mxu0 %v2732_v5 }
 0x178   : >> { %2007 = vmatpush3.bf16.msra.mxu1 %v2004_v2 }
 0x179   : >> { %1869 = vmatmul.mubr.msk.f32.vlgmr.msra.gmra.mrb[2].mxu0 %vm863_vm2, %v1843_v10  ;;  %v2138_v10 = vmov 0   ;;  %2012 = vmatprep.subr.bf16.mxu1 %v2732_v5 }
 0x17a   : >> { %2097 = vset.pattern.permute.xlu1 %v2138_v10 }
 0x17b   : >> { %1128 = vperm.xlu1 %2097, %v2355_v18  }
 0x17f   : >> { %1133 = vperm.xlu1 %2097, %v2357_v19  }
 0x24c   : >> { %v1870_v11 = vpop.f32.mrb[2].mxu0 }
 0x24d   : >> { %v1033_v62 = vadd.f32 %v1870_v11, %v2320_v13  ;;  %v1017_v0 = vpop.f32.mrb[3].mxu0  ;;  %v2730_v11 = vmov 0.0  }
 0x24e   : >> { %v1032_v63 = vadd.f32 %v2320_v13, %v1017_v0  ;;  %1894 = vmatprep.mubr.msk.f32.mxu0 %vm2140_vm4, %v2730_v11  ;;  %v1140_v0 = vpop.permute.xlu0 %1139 }
 0x250   : >> { %2098 = vtanh.f32 %v1032_v63  ;;  %v1144_v63 = vpop.permute.xlu1 %1143 }
 0x251   : >> { %2100 = vtanh.f32 %v1033_v62  ;;  %v2013_v62 = vpack.c.bf16 %v2392_v26, %v2387_v25 }
 0x25a   : >> { %v2099_v60 = vpop.eup %2098 }
 0x25b   : >> { %v2101_v2 = vpop.eup %2100  ;;  %1887 = vmatprep.mubr.msk.f32.mxu1 %vm1042_vm3, %v2099_v60 }
 0x25c   : >> { %1888 = vmatmul.mubr.msk.f32.vlgmr.msra.gmra.mrb[2].mxu1 %vm1042_vm3, %v2101_v2 }
 0x25d   : >> { %1929 = vmatprep.mubr.msk.f32.mxu1 %vm2140_vm4, %v2730_v11  ;;  %2014 = vmatpush3.bf16.msra.mxu1 %v2013_v62  ;;  %v2022_v62 = vpack.c.bf16 %v2422_v32, %v2417_v31 }
 0x25e   : >> { %2015 = vmatprep.subr.bf16.mxu1 %v2732_v5 }
 0x32f   : >> { %v1889_v9 = vpop.f32.mrb[2].mxu1 }
 0x330   : >> { %v1121_v10 = vadd.f32 %v1889_v9, %v2382_v24  ;;  %v1115_v1 = vpop.f32.mrb[3].mxu1 }
 0x331   : >> { %v1116_v3 = vadd.f32 %v2382_v24, %v1115_v1 }
 0x332   : >> { %2102 = vtanh.f32 %v1121_v10  ;;  %v2019_v10 = vpack.c.bf16 %v2412_v30, %v2407_v29 }
 0x333   : >> { %2104 = vtanh.f32 %v1116_v3  ;;  %v2016_v3 = vpack.c.bf16 %v2402_v28, %v2397_v27 }
 0x335   : >> { %2017 = vmatpush3.bf16.msra.mxu1 %v2016_v3  ;;  %v2031_v3 = vpack.c.bf16 %v2452_v38, %v2447_v37 }
 0x336   : >> { %2018 = vmatprep.subr.bf16.mxu1 %v2732_v5 }
 0x339   : >> { %2020 = vmatpush3.bf16.msra.mxu1 %v2019_v10 }
 0x33a   : >> { %2021 = vmatprep.subr.bf16.mxu1 %v2732_v5 }
 0x33c   : >> { %v2103_v1 = vpop.eup %2102 }
 0x33d   : >> { %v2105_v60 = vpop.eup %2104  ;;  %v1147_v2 = vmul.f32 %v2103_v1, %v1144_v63  ;;  %2023 = vmatpush3.bf16.msra.mxu1 %v2022_v62  ;;  %v2028_v63 = vpack.c.bf16 %v2442_v36, %v2437_v35 }
 0x33e   : >> { %v1146_v9 = vmul.f32 %v2105_v60, %v1140_v0  ;;  %v2025_v0 = vpack.c.bf16 %v2432_v34, %v2427_v33  ;;  %2024 = vmatprep.subr.bf16.mxu1 %v2732_v5 }
 0x33f   : >> { %1152 = vrot.lane.b32.xlu1 %v1147_v2, %s2136_s3  ;;  %v2034_v2 = vpack.c.bf16 %v2462_v40, %v2457_v39 }
 0x340   : >> { %1150 = vrot.lane.b32.xlu0 %v1146_v9, %s2136_s3  ;;  %v1129_v9 = vpop.permute.xlu1 %1128 }
 0x341   : >> { %2026 = vmatpush3.bf16.msra.mxu1 %v2025_v0  ;;  %v1136_v0 = vmul.f32 %v2105_v60, %v1129_v9 }
 0x342   : >> { %2027 = vmatprep.subr.bf16.mxu1 %v2732_v5 }
 0x344   : >> { %v1134_v10 = vpop.permute.xlu1 %1133 }
 0x345   : >> { %2029 = vmatpush3.bf16.msra.mxu1 %v2028_v63  ;;  %v1137_v62 = vmul.f32 %v2103_v1, %v1134_v10 }
 0x346   : >> { %2030 = vmatprep.subr.bf16.mxu1 %v2732_v5 }
 0x349   : >> { %2032 = vmatpush3.bf16.msra.mxu1 %v2031_v3 }
 0x34a   : >> { %2033 = vmatprep.subr.bf16.mxu1 %v2732_v5 }
 0x34d   : >> { %2035 = vmatpush3.bf16.msra.mxu1 %v2034_v2  ;;  %v2037_v2 = vpack.c.bf16 %v2477_v43, %v2472_v42 }
 0x3b1   : >> { %v1153_v11 = vpop.permute.xlu1 %1152 }
 0x3b2   : >> { %v1157_v6 = vadd.f32 %v1153_v11, %v1137_v62  ;;  %v1151_v7 = vpop.permute.xlu0 %1150  ;;  %v2040_v11 = vpack.c.bf16 %v2487_v45, %v2482_v44 }
 0x3b3   : >> { %v1156_v63 = vadd.f32 %v1151_v7, %v1136_v0  ;;  %v2773_v7 = vmov 0.0  }
 0x3b5   : >> { %v2009_v3 = vpack.c.bf16 %v1157_v6, %v1156_v63  ;;  %v2658_v6 = vld [vmem:[%s692_s26] sm:$0xf] }
 0x3b6   : >> { %1930 = vmatmul.mubr.f32.vlgmr.msra.gmra.mrb[4].mxu1 %v2658_v6 }
 0x3b7   : >> { %2011 = vmatpush3.bf16.msk.msra.mxu0 %vm2010_vm6, %v2009_v3 }
 0x3b8   : >> { %2036 = vmatprep.subr.bf16.mxu0 %v2732_v5 }
 0x3ba   : >> { %1895 = vmatmul.mubr.msk.f32.vlgmr.msra.gmra.mrb[4].mxu0 %vm1158_vm7, %v2772_v4 }
 0x3bb   : >> { %2038 = vmatpush3.bf16.msra.mxu0 %v2037_v2  ;;  %1940 = vmatprep.mubr.msk.f32.mxu0 %vm2140_vm4, %v2773_v7 }
 0x3bc   : >> { %2039 = vmatprep.subr.bf16.mxu0 %v2732_v5 }
 0x3bf   : >> { %2041 = vmatpush3.bf16.msra.mxu0 %v2040_v11 }
 0x3c0   : >> { %2042 = vmatprep.subr.bf16.mxu0 %v2732_v5 }
 0x489   : >> { %v1307_v9 = vpop.f32.mrb[4].mxu1 }
 0x48a   : >> { %v1931_v10 = vpop.f32.mrb[5].mxu1  ;;  %v1308_v63 = vadd.f32 %v2467_v41, %v1307_v9  ;;  %v2046_v9 = vpack.c.bf16 %v2507_v49, %v2502_v48 }
 0x48b   : >> { %v2043_v10 = vpack.c.bf16 %v2497_v47, %v2492_v46 }
 0x48d   : >> { %v1231_v1 = vpop.f32.mrb[4].mxu0 }
 0x48e   : >> { %v1896_v60 = vpop.f32.mrb[5].mxu0  ;;  %1941 = vmatmul.mubr.msk.f32.vlgmr.msra.gmra.mrb[6].mxu0 %vm863_vm2, %v1231_v1 }
 0x48f   : >> { %1951 = vmatprep.mubr.msk.f32.mxu0 %vm2140_vm4, %v2773_v7  ;;  %2044 = vmatpush3.bf16.msra.mxu0 %v2043_v10  ;;  %v2055_v10 = vpack.c.bf16 %v2547_v57, %v2542_v56 }
 0x561   : >> { %v1380_v62 = vpop.f32.mrb[6].mxu0 }
 0x562   : >> { %1392 = vrot.lane.b32.xlu0 %v1380_v62, %s2143_s1  ;;  %v1942_v0 = vpop.f32.mrb[7].mxu0  ;;  %v1384_v3 = vadd.f32 %v1380_v62, %v1308_v63  ;;  %v2774_v62 = vmov 0.0|0.0  }
 0x563   : >> { %2045 = vmatprep.subr.bf16.mxu0 %v2774_v62 }
 0x564   : >> { %v1761_v2 = vmul.f32 -1.442695, %v1384_v3  ;;  %2047 = vmatpush3.bf16.msra.mxu0 %v2046_v9 }
 0x565   : >> { %2048 = vmatprep.subr.bf16.mxu0 %v2774_v62 }
 0x566   : >> { %2106 = vpow2.f32 %v1761_v2  ;;  %v2052_v2 = vpack.c.bf16 %v2532_v54, %v2527_v53 }
 0x570   : >> { %v2107_v11 = vpop.eup %2106 }
 0x571   : >> { %v1388_v5 = vadd.f32 1.0, %v2107_v11 }
 0x573   : >> { %2108 = vrcp.f32 %v1388_v5 }
 0x57d   : >> { %v2109_v60 = vpop.eup %2108 }
 0x5d4   : >> { %v1393_v4 = vpop.permute.xlu0 %1392 }
 0x5d5   : >> { %v1395_v1 = vmul.f32 %v2109_v60, %v1393_v4  ;;  %v1402_v4 = vsub.f32 1.0, %v2109_v60 }
 0x5d7   : >> { %1397 = vrot.lane.b32.xlu1 %v1395_v1, %s2143_s1 }
 0x649   : >> { %v1398_v8 = vpop.permute.xlu1 %1397 }
 0x64a   : >> { %v1400_v12 = vadd.f32 %v1398_v8, %v1308_v63  ;;  %v1408_v8 = vmul.f32 %v2130_v61, %v2109_v60  ;;  %v2049_v63 = vpack.c.bf16 %v2522_v52, %v2517_v51 }
 0x64c   : >> { %2110 = vtanh.f32 %v1400_v12 }
 0x656   : >> { %v2111_v5 = vpop.eup %2110 }
 0x657   : >> { %1404 = vrot.lane.b32.xlu0 %v2111_v5, %s2136_s3  ;;  %v2058_v5 = vpack.c.bf16 %v2557_v59, %v2552_v58 }
 0x6c9   : >> { %v1405_v0 = vpop.permute.xlu0 %1404 }
 0x6ca   : >> { %v1407_v12 = vmul.f32 %v1405_v0, %v1402_v4 }
 0x6cc   : >> { %v1409_v61 = vadd.f32 %v1408_v8, %v1407_v12  }
 0x6ce   : >> { %1417 = vrot.lane.b32.xlu1 %v1409_v61, %s2136_s3 }
 0x740   : >> { %v1418_v3 = vpop.permute.xlu1 %1417 }
 0x741   : >> { %1952 = vmatmul.mubr.msk.f32.vlgmr.msra.gmra.mrb[8].mxu0 %vm863_vm2, %v1418_v3  ;;  %v2775_v3 = vld [vmem:[#allocation15_spill] sm:$0xff] }
 0x742   : >> { %2050 = vmatpush3.bf16.msra.mxu0 %v2049_v63  ;;  %1962 = vmatprep.mubr.msk.f32.mxu0 %vm2140_vm4, %v2773_v7 }
 0x743   : >> { %2051 = vmatprep.subr.bf16.mxu0 %v2774_v62 }
 0x746   : >> { %2053 = vmatpush3.bf16.msra.mxu0 %v2052_v2 }
 0x747   : >> { %2054 = vmatprep.subr.bf16.mxu0 %v2774_v62 }
 0x814   : >> { %v1487_v11 = vpop.f32.mrb[8].mxu0 }
 0x815   : >> { %v1488_v60 = vadd.f32 %v2512_v50, %v1487_v11  ;;  %v1953_v1 = vpop.f32.mrb[9].mxu0 }
 0x817   : >> { %v1491_v9 = vmax.f32 %v1488_v60, 0.0 }
 0x819   : >> { %1963 = vmatmul.mubr.msk.f32.vlgmr.msra.gmra.mrb[10].mxu0 %vm863_vm2, %v1491_v9 }
 0x81a   : >> { %2056 = vmatpush3.bf16.msra.mxu0 %v2055_v10  ;;  %1973 = vmatprep.mubr.msk.f32.mxu0 %vm2140_vm4, %v2773_v7 }
 0x81b   : >> { %2057 = vmatprep.subr.bf16.mxu0 %v2774_v62 }
 0x81e   : >> { %2059 = vmatpush3.bf16.msra.mxu0 %v2058_v5 }
 0x8ec   : >> { %v1567_v4 = vpop.f32.mrb[10].mxu0 }
 0x8ed   : >> { %v1568_v0 = vadd.f32 %v2537_v55, %v1567_v4  ;;  %v1964_v8 = vpop.f32.mrb[11].mxu0 }
 0x8ef   : >> { %v1571_v12 = vmax.f32 %v1568_v0, 0.0 }
 0x8f1   : >> { %1974 = vmatmul.mubr.msk.f32.vlgmr.msra.gmra.mrb[12].mxu0 %vm863_vm2, %v1571_v12 }
 0x9c3   : > { %688 = sbr.rel (!%p686_p4) target bundleno = 36 (0x24), region = 138 }
 0x9c4   : >> { %v1647_v63 = vpop.f32.mrb[12].mxu0 }
 0x9c5   : >> { %v1648_v2 = vadd.f32 %v2775_v3, %v1647_v63  ;;  %v1975_v11 = vpop.f32.mrb[13].mxu0 }
 0x9c7   : >> { %v1651_v7 = vadd.f32 %v1648_v2, %v2658_v6 }
 0x9c9   : >> { %1653 = vst [vmem:[%s1652_s27] sm:$0xf] %v1651_v7 }
 0x9ca PF: > { %s29_s0 = sadd.s32 1, %s2126_s0  }
 0x9cb   : > { %p26_p5 = scmp.ge.s32.totalorder %s29_s0, 4  }
 0x9cd   :  { %28 = sbr.rel (!%p26_p5) target bundleno = 7 (0x7), region = 149 }

</bundles_post_ra>
